<compile_context>
chip_gen: v6e
topology: v6e:2x2x1
jax: 0.10.0
libtpu: 0.0.40
codegen_flags: <defaults>
</compile_context>

<pallas_src>
from functools import partial

import jax
import jax.numpy as jnp
from jax.experimental import pallas as pl
from jax.experimental.pallas import tpu as pltpu

_LANES = 128


def _round_up(x, m):
    return (x + m - 1) // m * m


def _choose_tile_oh(Ho, Wp, Cp, stride, budget_bytes=4 * 2**20):
    """Largest divisor of Ho whose double-buffered input tile fits the budget."""
    row_bytes = max(1, stride * Wp * Cp * 4)
    max_rows = max(1, budget_bytes // (2 * row_bytes))
    target = max(1, int(min(Ho, min(32, max_rows))))
    for cand in range(target, 0, -1):
        if Ho % cand == 0:
            return cand
    return 1


def _dwpw_kernel(xm_ref, xh0_ref, xh1_ref, wdw_ref, bdw_ref, wpw_ref, bpw_ref,
                 o_ref, xs_ref, *, tile_oh, tile_ih, Wo, stride, Cp, Coutp):
    # xm_ref:  (1, tile_ih, Wp, Cp)  main row tile of the padded NHWC input
    # xh0/1:   (1, 1, Wp, Cp)        the two halo rows just below the main tile
    # wdw_ref: (3, 3, Cp)            depthwise weights (BN scale pre-folded), f32
    # bdw_ref: (1, Cp)               depthwise BN shift
    # wpw_ref: (Cp, Coutp)           pointwise weights (BN scale pre-folded), bf16
    # bpw_ref: (1, Coutp)            pointwise BN shift
    # o_ref:   (1, tile_oh, Wo, Coutp)
    # xs_ref:  (tile_ih + 2, Wp, Cp) VMEM scratch holding the haloed tile

    # Assemble the haloed row tile in VMEM scratch.
    xs_ref[0:tile_ih] = xm_ref[0]
    xs_ref[tile_ih] = xh0_ref[0, 0]
    xs_ref[tile_ih + 1] = xh1_ref[0, 0]

    # Depthwise 3x3: 3 width-shifted views (one per dx), each reused across the
    # 3 dy taps; dy taps are outer-dim row slices (cheap, no sublane relayout).
    acc = jnp.zeros((tile_oh, Wo, Cp), jnp.float32)
    for dx in range(3):
        if stride == 1:
            xw = xs_ref[:, dx:dx + Wo, :]                    # (tile_ih+2, Wo, Cp)
        else:
            # compute only strided output columns
            xw = xs_ref[:, pl.ds(dx, Wo, stride=stride), :]  # (tile_ih+2, Wo, Cp)
        xw = xw.astype(jnp.float32)
        for dy in range(3):
            if stride == 1:
                rows = xw[dy:dy + tile_oh]
            else:
                # compute only strided output rows (outer-dim split, layout-free)
                rows = xw[dy:dy + tile_oh * stride].reshape(
                    tile_oh, stride, Wo, Cp)[:, 0]
            acc = acc + rows * wdw_ref[dy, dx, :]
    # BN shift + ReLU (scale already folded into wdw)
    dw = jnp.maximum(acc + bdw_ref[0], 0.0)

    # Pointwise 1x1 conv == matmul over channels: bf16 operands, f32 accumulate.
    dwm = dw.reshape(tile_oh * Wo, Cp).astype(jnp.bfloat16)
    pw = jnp.dot(dwm, wpw_ref[...], preferred_element_type=jnp.float32)
    pw = jnp.maximum(pw + bpw_ref[0], 0.0)                   # BN shift + ReLU

    o_ref[0] = pw.reshape(tile_oh, Wo, Coutp).astype(o_ref.dtype)


def depthwise_pointwise_conv(x_nchw, params, stride=1, tile_oh=None):
    """Forward pass. x_nchw: (N, Cin, H, W) float32 -> (N, Cout, Ho, Wo)."""
    N, Cin, H, W = x_nchw.shape
    w_dw = params["w_dw"]                      # (3, 3, Cin)
    w_pw = params["w_pw"]                      # (Cin, Cout)
    Cout = w_pw.shape[1]
    s = int(stride)
    Ho = (H + 2 - 3) // s + 1
    Wo = (W + 2 - 3) // s + 1

    Cp = _round_up(Cin, _LANES)                # lane-dense input channels
    Coutp = _round_up(Cout, _LANES)            # lane-dense output channels
    Wp = W + 2

    if tile_oh is None:
        tile_oh = _choose_tile_oh(Ho, Wp, Cp, s)
    if Ho % tile_oh != 0:
        raise ValueError(f"tile_oh={tile_oh} must divide Ho={Ho}")
    T = Ho // tile_oh
    tile_ih = tile_oh * s

    # ---- parameter prep (tiny): fold BN scales into the conv weights, pad
    #      channels to lane multiples; padded channels have zero weight/shift.
    sdw = params["scale_dw"].astype(jnp.float32)
    spw = params["scale_pw"].astype(jnp.float32)
    wdw = jnp.pad((w_dw * sdw[None, None, :]).astype(jnp.float32),
                  ((0, 0), (0, 0), (0, Cp - Cin)))
    wpw = jnp.pad((w_pw * spw[None, :]).astype(jnp.bfloat16),
                  ((0, Cp - Cin), (0, Coutp - Cout)))
    bdw = jnp.pad(params["shift_dw"].astype(jnp.float32),
                  (0, Cp - Cin)).reshape(1, Cp)
    bpw = jnp.pad(params["shift_pw"].astype(jnp.float32),
                  (0, Coutp - Cout)).reshape(1, Coutp)

    # ---- activation layout: NCHW -> NHWC, one fused pad (spatial halo + the
    #      lane-dense channel pad) so the spatial pad adds no extra HBM pass.
    x = jnp.transpose(x_nchw, (0, 2, 3, 1))
    extra_bottom = max(0, Ho * s - H)          # ensure the last tile's halo rows exist
    xp = jnp.pad(x, ((0, 0), (1, 1 + extra_bottom), (1, 1), (0, Cp - Cin)))

    kernel = partial(_dwpw_kernel, tile_oh=tile_oh, tile_ih=tile_ih, Wo=Wo,
                     stride=s, Cp=Cp, Coutp=Coutp)

    # ---- explicit VMEM budget: double-buffered pipeline IO + scratch + temps,
    #      with generous headroom (still well under v7x's 64 MiB per core).
    bpe = xp.dtype.itemsize
    io_bytes = 2 * (tile_ih * Wp * Cp * bpe            # main input tile
                    + 2 * Wp * Cp * bpe                # two halo rows
                    + tile_oh * Wo * Coutp * 4         # output tile
                    + (3 * 3 * Cp + Cp) * 4 + Cp * Coutp * 2 + Coutp * 4)
    tmp_bytes = ((tile_ih + 2) * Wp * Cp * bpe         # scratch
                 + (tile_ih + 2) * Wo * Cp * 4         # shifted view
                 + 3 * tile_oh * Wo * Cp * 4           # acc / dw / bf16 cast
                 + 2 * tile_oh * Wo * Coutp * 4)       # matmul result
    vmem_limit = int(min(max(2 * (io_bytes + tmp_bytes), 16 * 2**20), 64 * 2**20))

    in_specs = [
        # main row tile (tile_ih padded input rows)
        pl.BlockSpec((1, tile_ih, Wp, Cp), lambda n, t: (n, t, 0, 0)),
        # two 1-row halo blocks just below the main tile (same array, re-read)
        pl.BlockSpec((1, 1, Wp, Cp), lambda n, t: (n, (t + 1) * tile_ih, 0, 0)),
        pl.BlockSpec((1, 1, Wp, Cp), lambda n, t: (n, (t + 1) * tile_ih + 1, 0, 0)),
        pl.BlockSpec((3, 3, Cp), lambda n, t: (0, 0, 0)),
        pl.BlockSpec((1, Cp), lambda n, t: (0, 0)),
        pl.BlockSpec((Cp, Coutp), lambda n, t: (0, 0)),
        pl.BlockSpec((1, Coutp), lambda n, t: (0, 0)),
    ]

    out_nhwc = pl.pallas_call(
        kernel,
        out_shape=jax.ShapeDtypeStruct((N, Ho, Wo, Coutp), x.dtype),
        grid_spec=pltpu.PrefetchScalarGridSpec(
            num_scalar_prefetch=0,
            grid=(N, T),
            in_specs=in_specs,
            out_specs=pl.BlockSpec((1, tile_oh, Wo, Coutp),
                                   lambda n, t: (n, t, 0, 0)),
            scratch_shapes=[pltpu.VMEM((tile_ih + 2, Wp, Cp), xp.dtype)],
        ),
        compiler_params=pltpu.CompilerParams(
            dimension_semantics=("parallel", "parallel"),
            vmem_limit_bytes=vmem_limit),
    )(xp, xp, xp, wdw, bdw, wpw, bpw)

    out = out_nhwc[:, :, :, :Cout]             # drop lane padding
    return jnp.transpose(out, (0, 3, 1, 2))    # NHWC -> NCHW


if __name__ == "__main__":
    key = jax.random.PRNGKey(0)
    N, Cin, H, W, Cout = 2, 4, 16, 16, 8
    keys = jax.random.split(key, 7)

    x = jax.random.normal(keys[0], (N, Cin, H, W), jnp.float32)

    # depthwise Conv2d weight: (Cin, 1, 3, 3) -> kernel layout (3, 3, Cin)
    w_dw_oihw = jax.random.normal(keys[1], (Cin, 1, 3, 3), jnp.float32) * 0.1
    w_dw = jnp.transpose(w_dw_oihw[:, 0], (1, 2, 0))
    # pointwise Conv2d weight: (Cout, Cin, 1, 1) -> kernel layout (Cin, Cout)
    w_pw_oihw = jax.random.normal(keys[2], (Cout, Cin, 1, 1), jnp.float32) * 0.1
    w_pw = jnp.transpose(w_pw_oihw[:, :, 0, 0], (1, 0))

    # Inference-mode BatchNorm parameters, folded to per-channel scale / shift.
    eps = 1e-5
    g1 = jax.random.uniform(keys[3], (Cin,), minval=0.5, maxval=1.5)
    b1 = jax.random.normal(keys[4], (Cin,), jnp.float32) * 0.1
    m1, v1 = jnp.zeros((Cin,)), jnp.ones((Cin,))
    g2 = jax.random.uniform(keys[5], (Cout,), minval=0.5, maxval=1.5)
    b2 = jax.random.normal(keys[6], (Cout,), jnp.float32) * 0.1
    m2, v2 = jnp.zeros((Cout,)), jnp.ones((Cout,))

    s1 = g1 / jnp.sqrt(v1 + eps)
    sh1 = b1 - m1 * s1
    s2 = g2 / jnp.sqrt(v2 + eps)
    sh2 = b2 - m2 * s2

    params = dict(w_dw=w_dw, w_pw=w_pw,
                  scale_dw=s1, shift_dw=sh1,
                  scale_pw=s2, shift_pw=sh2)

    def reference(xin, stride):
        r = jax.lax.conv_general_dilated(
            xin, w_dw_oihw, window_strides=(stride, stride),
            padding=((1, 1), (1, 1)), feature_group_count=Cin,
            dimension_numbers=("NCHW", "OIHW", "NCHW"))
        r = jnp.maximum(r * s1[None, :, None, None] + sh1[None, :, None, None], 0.0)
        r = jax.lax.conv_general_dilated(
            r, w_pw_oihw, window_strides=(1, 1), padding="VALID",
            dimension_numbers=("NCHW", "OIHW", "NCHW"))
        return jnp.maximum(r * s2[None, :, None, None] + sh2[None, :, None, None], 0.0)

    # Test stride=1 and stride=2, each with multiple row tiles per image so the
    # halo path is exercised.  Tolerance is loosened for the bf16 MXU matmul
    # (f32 accumulation keeps the error at the ~1e-3 level).
    for stride, tile_oh in ((1, 8), (2, 4)):
        out = jax.block_until_ready(
            depthwise_pointwise_conv(x, params, stride=stride, tile_oh=tile_oh))
        ref = reference(x, stride)
        assert out.shape == ref.shape, (stride, out.shape, ref.shape)
        err = float(jnp.max(jnp.abs(out - ref)))
        assert err < 2e-2, f"stride={stride}: max abs err {err}"

    print("KERNEL_OK")
</pallas_src>

<mosaic_0001>
module attributes {stable_mosaic.version = 11 : i64} {
  func.func @_dwpw_kernel(%arg0: i32, %arg1: i32, %arg2: memref<1x8x18x128xf32, #tpu.memory_space<vmem>>, %arg3: memref<1x1x18x128xf32, #tpu.memory_space<vmem>>, %arg4: memref<1x1x18x128xf32, #tpu.memory_space<vmem>>, %arg5: memref<3x3x128xf32, #tpu.memory_space<vmem>>, %arg6: memref<1x128xf32, #tpu.memory_space<vmem>>, %arg7: memref<128x128xbf16, #tpu.memory_space<vmem>>, %arg8: memref<1x128xf32, #tpu.memory_space<vmem>>, %arg9: memref<1x8x16x128xf32, #tpu.memory_space<vmem>>, %arg10: memref<10x18x128xf32, #tpu.memory_space<vmem>>) attributes {dimension_semantics = [#tpu.dimension_semantics<parallel>, #tpu.dimension_semantics<parallel>], iteration_bounds = array<i64: 2, 2>, scalar_prefetch = 0 : i64, scratch_operands = 1 : i64, tpu.core_type = #tpu.core_type<tc>, window_params = [{transform_indices = @transform_0, window_bounds = array<i64: 1, 8, 18, 128>}, {transform_indices = @transform_1, window_bounds = array<i64: 1, 1, 18, 128>}, {transform_indices = @transform_2, window_bounds = array<i64: 1, 1, 18, 128>}, {pipeline_mode = #tpu.pipeline_mode<synchronous>, transform_indices = @transform_3, window_bounds = array<i64: 3, 3, 128>}, {pipeline_mode = #tpu.pipeline_mode<synchronous>, transform_indices = @transform_4, window_bounds = array<i64: 1, 128>}, {pipeline_mode = #tpu.pipeline_mode<synchronous>, transform_indices = @transform_5, window_bounds = array<i64: 128, 128>}, {pipeline_mode = #tpu.pipeline_mode<synchronous>, transform_indices = @transform_6, window_bounds = array<i64: 1, 128>}, {transform_indices = @transform_7, window_bounds = array<i64: 1, 8, 16, 128>}]} {
    %c0 = arith.constant 0 : index
    %c0_0 = arith.constant 0 : index
    %c0_1 = arith.constant 0 : index
    %c0_2 = arith.constant 0 : index
    %0 = vector.load %arg2[%c0, %c0_0, %c0_1, %c0_2] : memref<1x8x18x128xf32, #tpu.memory_space<vmem>>, vector<1x8x18x128xf32>
    %1 = vector.shape_cast %0 : vector<1x8x18x128xf32> to vector<8x18x128xf32>
    %c0_3 = arith.constant 0 : index
    %c0_4 = arith.constant 0 : index
    %c0_5 = arith.constant 0 : index
    %2 = vector.load %arg10[%c0_3, %c0_4, %c0_5] : memref<10x18x128xf32, #tpu.memory_space<vmem>>, vector<8x18x128xf32>
    tpu.vector_store %arg10[%c0_3, %c0_4, %c0_5], %1 {strides = array<i32>} : memref<10x18x128xf32, #tpu.memory_space<vmem>>, vector<8x18x128xf32>,
    %c0_6 = arith.constant 0 : index
    %c0_7 = arith.constant 0 : index
    %c0_8 = arith.constant 0 : index
    %c0_9 = arith.constant 0 : index
    %3 = vector.load %arg3[%c0_6, %c0_7, %c0_8, %c0_9] : memref<1x1x18x128xf32, #tpu.memory_space<vmem>>, vector<1x1x18x128xf32>
    %4 = vector.shape_cast %3 : vector<1x1x18x128xf32> to vector<18x128xf32>
    %c8 = arith.constant 8 : index
    %c0_10 = arith.constant 0 : index
    %c0_11 = arith.constant 0 : index
    %5 = vector.load %arg10[%c8, %c0_10, %c0_11] : memref<10x18x128xf32, #tpu.memory_space<vmem>>, vector<1x18x128xf32>
    %6 = vector.shape_cast %5 : vector<1x18x128xf32> to vector<18x128xf32>
    %7 = vector.shape_cast %4 : vector<18x128xf32> to vector<1x18x128xf32>
    tpu.vector_store %arg10[%c8, %c0_10, %c0_11], %7 {strides = array<i32>} : memref<10x18x128xf32, #tpu.memory_space<vmem>>, vector<1x18x128xf32>,
    %c0_12 = arith.constant 0 : index
    %c0_13 = arith.constant 0 : index
    %c0_14 = arith.constant 0 : index
    %c0_15 = arith.constant 0 : index
    %8 = vector.load %arg4[%c0_12, %c0_13, %c0_14, %c0_15] : memref<1x1x18x128xf32, #tpu.memory_space<vmem>>, vector<1x1x18x128xf32>
    %9 = vector.shape_cast %8 : vector<1x1x18x128xf32> to vector<18x128xf32>
    %c9 = arith.constant 9 : index
    %c0_16 = arith.constant 0 : index
    %c0_17 = arith.constant 0 : index
    %10 = vector.load %arg10[%c9, %c0_16, %c0_17] : memref<10x18x128xf32, #tpu.memory_space<vmem>>, vector<1x18x128xf32>
    %11 = vector.shape_cast %10 : vector<1x18x128xf32> to vector<18x128xf32>
    %12 = vector.shape_cast %9 : vector<18x128xf32> to vector<1x18x128xf32>
    tpu.vector_store %arg10[%c9, %c0_16, %c0_17], %12 {strides = array<i32>} : memref<10x18x128xf32, #tpu.memory_space<vmem>>, vector<1x18x128xf32>,
    %cst = arith.constant 0.000000e+00 : f32
    %13 = vector.broadcast %cst : f32 to vector<8x16x128xf32>
    %c0_18 = arith.constant 0 : index
    %c0_19 = arith.constant 0 : index
    %c0_20 = arith.constant 0 : index
    %14 = vector.load %arg10[%c0_18, %c0_19, %c0_20] : memref<10x18x128xf32, #tpu.memory_space<vmem>>, vector<10x16x128xf32>
    %15 = vector.extract_strided_slice %14 {offsets = [0, 0, 0], sizes = [8, 16, 128], strides = [1, 1, 1]} : vector<10x16x128xf32> to vector<8x16x128xf32>
    %c0_21 = arith.constant 0 : index
    %c0_22 = arith.constant 0 : index
    %c0_23 = arith.constant 0 : index
    %16 = vector.load %arg5[%c0_21, %c0_22, %c0_23] : memref<3x3x128xf32, #tpu.memory_space<vmem>>, vector<1x1x128xf32>
    %17 = vector.shape_cast %16 : vector<1x1x128xf32> to vector<128xf32>
    %18 = vector.shape_cast %17 : vector<128xf32> to vector<1x1x128xf32>
    %19 = vector.broadcast %18 : vector<1x1x128xf32> to vector<8x16x128xf32>
    %20 = arith.mulf %15, %19 : vector<8x16x128xf32>
    %21 = arith.addf %13, %20 : vector<8x16x128xf32>
    %22 = vector.extract_strided_slice %14 {offsets = [1, 0, 0], sizes = [8, 16, 128], strides = [1, 1, 1]} : vector<10x16x128xf32> to vector<8x16x128xf32>
    %c1 = arith.constant 1 : index
    %c0_24 = arith.constant 0 : index
    %c0_25 = arith.constant 0 : index
    %23 = vector.load %arg5[%c1, %c0_24, %c0_25] : memref<3x3x128xf32, #tpu.memory_space<vmem>>, vector<1x1x128xf32>
    %24 = vector.shape_cast %23 : vector<1x1x128xf32> to vector<128xf32>
    %25 = vector.shape_cast %24 : vector<128xf32> to vector<1x1x128xf32>
    %26 = vector.broadcast %25 : vector<1x1x128xf32> to vector<8x16x128xf32>
    %27 = arith.mulf %22, %26 : vector<8x16x128xf32>
    %28 = arith.addf %21, %27 : vector<8x16x128xf32>
    %29 = vector.extract_strided_slice %14 {offsets = [2, 0, 0], sizes = [8, 16, 128], strides = [1, 1, 1]} : vector<10x16x128xf32> to vector<8x16x128xf32>
    %c2 = arith.constant 2 : index
    %c0_26 = arith.constant 0 : index
    %c0_27 = arith.constant 0 : index
    %30 = vector.load %arg5[%c2, %c0_26, %c0_27] : memref<3x3x128xf32, #tpu.memory_space<vmem>>, vector<1x1x128xf32>
    %31 = vector.shape_cast %30 : vector<1x1x128xf32> to vector<128xf32>
    %32 = vector.shape_cast %31 : vector<128xf32> to vector<1x1x128xf32>
    %33 = vector.broadcast %32 : vector<1x1x128xf32> to vector<8x16x128xf32>
    %34 = arith.mulf %29, %33 : vector<8x16x128xf32>
    %35 = arith.addf %28, %34 : vector<8x16x128xf32>
    %c0_28 = arith.constant 0 : index
    %c1_29 = arith.constant 1 : index
    %c0_30 = arith.constant 0 : index
    %36 = vector.load %arg10[%c0_28, %c1_29, %c0_30] : memref<10x18x128xf32, #tpu.memory_space<vmem>>, vector<10x16x128xf32>
    %37 = vector.extract_strided_slice %36 {offsets = [0, 0, 0], sizes = [8, 16, 128], strides = [1, 1, 1]} : vector<10x16x128xf32> to vector<8x16x128xf32>
    %c0_31 = arith.constant 0 : index
    %c1_32 = arith.constant 1 : index
    %c0_33 = arith.constant 0 : index
    %38 = vector.load %arg5[%c0_31, %c1_32, %c0_33] : memref<3x3x128xf32, #tpu.memory_space<vmem>>, vector<1x1x128xf32>
    %39 = vector.shape_cast %38 : vector<1x1x128xf32> to vector<128xf32>
    %40 = vector.shape_cast %39 : vector<128xf32> to vector<1x1x128xf32>
    %41 = vector.broadcast %40 : vector<1x1x128xf32> to vector<8x16x128xf32>
    %42 = arith.mulf %37, %41 : vector<8x16x128xf32>
    %43 = arith.addf %35, %42 : vector<8x16x128xf32>
    %44 = vector.extract_strided_slice %36 {offsets = [1, 0, 0], sizes = [8, 16, 128], strides = [1, 1, 1]} : vector<10x16x128xf32> to vector<8x16x128xf32>
    %c1_34 = arith.constant 1 : index
    %c1_35 = arith.constant 1 : index
    %c0_36 = arith.constant 0 : index
    %45 = vector.load %arg5[%c1_34, %c1_35, %c0_36] : memref<3x3x128xf32, #tpu.memory_space<vmem>>, vector<1x1x128xf32>
    %46 = vector.shape_cast %45 : vector<1x1x128xf32> to vector<128xf32>
    %47 = vector.shape_cast %46 : vector<128xf32> to vector<1x1x128xf32>
    %48 = vector.broadcast %47 : vector<1x1x128xf32> to vector<8x16x128xf32>
    %49 = arith.mulf %44, %48 : vector<8x16x128xf32>
    %50 = arith.addf %43, %49 : vector<8x16x128xf32>
    %51 = vector.extract_strided_slice %36 {offsets = [2, 0, 0], sizes = [8, 16, 128], strides = [1, 1, 1]} : vector<10x16x128xf32> to vector<8x16x128xf32>
    %c2_37 = arith.constant 2 : index
    %c1_38 = arith.constant 1 : index
    %c0_39 = arith.constant 0 : index
    %52 = vector.load %arg5[%c2_37, %c1_38, %c0_39] : memref<3x3x128xf32, #tpu.memory_space<vmem>>, vector<1x1x128xf32>
    %53 = vector.shape_cast %52 : vector<1x1x128xf32> to vector<128xf32>
    %54 = vector.shape_cast %53 : vector<128xf32> to vector<1x1x128xf32>
    %55 = vector.broadcast %54 : vector<1x1x128xf32> to vector<8x16x128xf32>
    %56 = arith.mulf %51, %55 : vector<8x16x128xf32>
    %57 = arith.addf %50, %56 : vector<8x16x128xf32>
    %c0_40 = arith.constant 0 : index
    %c2_41 = arith.constant 2 : index
    %c0_42 = arith.constant 0 : index
    %58 = vector.load %arg10[%c0_40, %c2_41, %c0_42] : memref<10x18x128xf32, #tpu.memory_space<vmem>>, vector<10x16x128xf32>
    %59 = vector.extract_strided_slice %58 {offsets = [0, 0, 0], sizes = [8, 16, 128], strides = [1, 1, 1]} : vector<10x16x128xf32> to vector<8x16x128xf32>
    %c0_43 = arith.constant 0 : index
    %c2_44 = arith.constant 2 : index
    %c0_45 = arith.constant 0 : index
    %60 = vector.load %arg5[%c0_43, %c2_44, %c0_45] : memref<3x3x128xf32, #tpu.memory_space<vmem>>, vector<1x1x128xf32>
    %61 = vector.shape_cast %60 : vector<1x1x128xf32> to vector<128xf32>
    %62 = vector.shape_cast %61 : vector<128xf32> to vector<1x1x128xf32>
    %63 = vector.broadcast %62 : vector<1x1x128xf32> to vector<8x16x128xf32>
    %64 = arith.mulf %59, %63 : vector<8x16x128xf32>
    %65 = arith.addf %57, %64 : vector<8x16x128xf32>
    %66 = vector.extract_strided_slice %58 {offsets = [1, 0, 0], sizes = [8, 16, 128], strides = [1, 1, 1]} : vector<10x16x128xf32> to vector<8x16x128xf32>
    %c1_46 = arith.constant 1 : index
    %c2_47 = arith.constant 2 : index
    %c0_48 = arith.constant 0 : index
    %67 = vector.load %arg5[%c1_46, %c2_47, %c0_48] : memref<3x3x128xf32, #tpu.memory_space<vmem>>, vector<1x1x128xf32>
    %68 = vector.shape_cast %67 : vector<1x1x128xf32> to vector<128xf32>
    %69 = vector.shape_cast %68 : vector<128xf32> to vector<1x1x128xf32>
    %70 = vector.broadcast %69 : vector<1x1x128xf32> to vector<8x16x128xf32>
    %71 = arith.mulf %66, %70 : vector<8x16x128xf32>
    %72 = arith.addf %65, %71 : vector<8x16x128xf32>
    %73 = vector.extract_strided_slice %58 {offsets = [2, 0, 0], sizes = [8, 16, 128], strides = [1, 1, 1]} : vector<10x16x128xf32> to vector<8x16x128xf32>
    %c2_49 = arith.constant 2 : index
    %c2_50 = arith.constant 2 : index
    %c0_51 = arith.constant 0 : index
    %74 = vector.load %arg5[%c2_49, %c2_50, %c0_51] : memref<3x3x128xf32, #tpu.memory_space<vmem>>, vector<1x1x128xf32>
    %75 = vector.shape_cast %74 : vector<1x1x128xf32> to vector<128xf32>
    %76 = vector.shape_cast %75 : vector<128xf32> to vector<1x1x128xf32>
    %77 = vector.broadcast %76 : vector<1x1x128xf32> to vector<8x16x128xf32>
    %78 = arith.mulf %73, %77 : vector<8x16x128xf32>
    %79 = arith.addf %72, %78 : vector<8x16x128xf32>
    %c0_52 = arith.constant 0 : index
    %c0_53 = arith.constant 0 : index
    %80 = vector.load %arg6[%c0_52, %c0_53] : memref<1x128xf32, #tpu.memory_space<vmem>>, vector<1x128xf32>
    %81 = vector.shape_cast %80 : vector<1x128xf32> to vector<128xf32>
    %82 = vector.shape_cast %81 : vector<128xf32> to vector<1x1x128xf32>
    %83 = vector.broadcast %82 : vector<1x1x128xf32> to vector<8x16x128xf32>
    %84 = arith.addf %79, %83 : vector<8x16x128xf32>
    %cst_54 = arith.constant 0.000000e+00 : f32
    %85 = vector.broadcast %cst_54 : f32 to vector<8x16x128xf32>
    %86 = arith.maximumf %84, %85 : vector<8x16x128xf32>
    %87 = vector.shape_cast %86 : vector<8x16x128xf32> to vector<128x128xf32>
    %88 = arith.truncf %87 : vector<128x128xf32> to vector<128x128xbf16>
    %c0_55 = arith.constant 0 : index
    %c0_56 = arith.constant 0 : index
    %89 = vector.load %arg7[%c0_55, %c0_56] : memref<128x128xbf16, #tpu.memory_space<vmem>>, vector<128x128xbf16>
    %cst_57 = arith.constant dense<0.000000e+00> : vector<128x128xf32>
    %90 = tpu.matmul %88, %89, %cst_57 {dimension_numbers = #tpu.dot_dimension_numbers<[1], [0], [0], [1], [0, 0, 1, 1], [], []>} : vector<128x128xbf16>, vector<128x128xbf16>, vector<128x128xf32> -> vector<128x128xf32>
    %c0_58 = arith.constant 0 : index
    %c0_59 = arith.constant 0 : index
    %91 = vector.load %arg8[%c0_58, %c0_59] : memref<1x128xf32, #tpu.memory_space<vmem>>, vector<1x128xf32>
    %92 = vector.shape_cast %91 : vector<1x128xf32> to vector<128xf32>
    %93 = vector.shape_cast %92 : vector<128xf32> to vector<1x128xf32>
    %94 = vector.broadcast %93 : vector<1x128xf32> to vector<128x128xf32>
    %95 = arith.addf %90, %94 : vector<128x128xf32>
    %cst_60 = arith.constant 0.000000e+00 : f32
    %96 = vector.broadcast %cst_60 : f32 to vector<128x128xf32>
    %97 = arith.maximumf %95, %96 : vector<128x128xf32>
    %98 = vector.shape_cast %97 : vector<128x128xf32> to vector<8x16x128xf32>
    %c0_61 = arith.constant 0 : index
    %c0_62 = arith.constant 0 : index
    %c0_63 = arith.constant 0 : index
    %c0_64 = arith.constant 0 : index
    %99 = vector.load %arg9[%c0_61, %c0_62, %c0_63, %c0_64] : memref<1x8x16x128xf32, #tpu.memory_space<vmem>>, vector<1x8x16x128xf32>
    %100 = vector.shape_cast %99 : vector<1x8x16x128xf32> to vector<8x16x128xf32>
    %101 = vector.shape_cast %98 : vector<8x16x128xf32> to vector<1x8x16x128xf32>
    tpu.vector_store %arg9[%c0_61, %c0_62, %c0_63, %c0_64], %101 {strides = array<i32>} : memref<1x8x16x128xf32, #tpu.memory_space<vmem>>, vector<1x8x16x128xf32>,
    return
  }
  func.func @transform_0(%arg0: i32, %arg1: i32) -> (i32, i32, i32, i32) {
    %c0_i32 = arith.constant 0 : i32
    %c0_i32_0 = arith.constant 0 : i32
    %c0_i32_1 = arith.constant 0 : i32
    return %arg0, %arg1, %c0_i32, %c0_i32_0 : i32, i32, i32, i32
  }
  func.func @transform_1(%arg0: i32, %arg1: i32) -> (i32, i32, i32, i32) {
    %c1_i32 = arith.constant 1 : i32
    %0 = arith.addi %arg1, %c1_i32 : i32
    %c8_i32 = arith.constant 8 : i32
    %1 = arith.muli %0, %c8_i32 : i32
    %c0_i32 = arith.constant 0 : i32
    %c0_i32_0 = arith.constant 0 : i32
    %c0_i32_1 = arith.constant 0 : i32
    return %arg0, %1, %c0_i32, %c0_i32_0 : i32, i32, i32, i32
  }
  func.func @transform_2(%arg0: i32, %arg1: i32) -> (i32, i32, i32, i32) {
    %c1_i32 = arith.constant 1 : i32
    %0 = arith.addi %arg1, %c1_i32 : i32
    %c8_i32 = arith.constant 8 : i32
    %1 = arith.muli %0, %c8_i32 : i32
    %c1_i32_0 = arith.constant 1 : i32
    %2 = arith.addi %1, %c1_i32_0 : i32
    %c0_i32 = arith.constant 0 : i32
    %c0_i32_1 = arith.constant 0 : i32
    %c0_i32_2 = arith.constant 0 : i32
    return %arg0, %2, %c0_i32, %c0_i32_1 : i32, i32, i32, i32
  }
  func.func @transform_3(%arg0: i32, %arg1: i32) -> (i32, i32, i32) {
    %c0_i32 = arith.constant 0 : i32
    %c0_i32_0 = arith.constant 0 : i32
    %c0_i32_1 = arith.constant 0 : i32
    %c0_i32_2 = arith.constant 0 : i32
    return %c0_i32, %c0_i32_0, %c0_i32_1 : i32, i32, i32
  }
  func.func @transform_4(%arg0: i32, %arg1: i32) -> (i32, i32) {
    %c0_i32 = arith.constant 0 : i32
    %c0_i32_0 = arith.constant 0 : i32
    %c0_i32_1 = arith.constant 0 : i32
    return %c0_i32, %c0_i32_0 : i32, i32
  }
  func.func @transform_5(%arg0: i32, %arg1: i32) -> (i32, i32) {
    %c0_i32 = arith.constant 0 : i32
    %c0_i32_0 = arith.constant 0 : i32
    %c0_i32_1 = arith.constant 0 : i32
    return %c0_i32, %c0_i32_0 : i32, i32
  }
  func.func @transform_6(%arg0: i32, %arg1: i32) -> (i32, i32) {
    %c0_i32 = arith.constant 0 : i32
    %c0_i32_0 = arith.constant 0 : i32
    %c0_i32_1 = arith.constant 0 : i32
    return %c0_i32, %c0_i32_0 : i32, i32
  }
  func.func @transform_7(%arg0: i32, %arg1: i32) -> (i32, i32, i32, i32) {
    %c0_i32 = arith.constant 0 : i32
    %c0_i32_0 = arith.constant 0 : i32
    %c0_i32_1 = arith.constant 0 : i32
    return %arg0, %arg1, %c0_i32, %c0_i32_0 : i32, i32, i32, i32
  }
}

</mosaic_0001>

<bundles_post_ra>
// kernel: tpu_custom_call.1
= control target key start
LH: loop header
LB: loop body
LE: loop exit
PB: predicated region body
PF: predicated region fallthrough
CT: control target
= control target key end

     0   :  { %12 = vsyncpa [#allocation4], 0  ;;  %s2414_s0 = inlined_call_operand.vmem [shape: f32[2,18,18,128], index: 0, kind: input, shape index: {}]   ;;  %s2415_s1 = inlined_call_operand.vmem [shape: f32[2,18,18,128], index: 1, kind: input, shape index: {}]   ;;  %s2416_s2 = inlined_call_operand.vmem [shape: f32[2,18,18,128], index: 2, kind: input, shape index: {}]   ;;  %s2417_s3 = inlined_call_operand.vmem [shape: f32[3,3,128], index: 3, kind: input, shape index: {}]   ;;  %s2418_s4 = inlined_call_operand.vmem [shape: f32[1,128], index: 4, kind: input, shape index: {}]   ;;  %s2419_s5 = inlined_call_operand.vmem [shape: bf16[128,128], index: 5, kind: input, shape index: {}]   ;;  %s2420_s6 = inlined_call_operand.vmem [shape: f32[1,128], index: 6, kind: input, shape index: {}]   ;;  %s2421_s7 = inlined_call_operand.hbm [shape: f32[2,16,16,128], index: 7, kind: output, shape index: {}]  }
   0x1   :  { %14 = vsyncpa [#allocation4 + $0x1], 0  ;;  %s1635_s24 = smov 0   ;;  %s1637_s25 = smov 0  }
   0x2   :  { %s1639_s26 = smov 0   ;;  %s1641_s27 = smov 0  }
   0x3   :  { %s1643_s28 = smov 0   ;;  %s1645_s29 = smov 0  }
   0x4   :  { %s1647_s30 = smov 0   ;;  %s1649_s8 = smov 0  }
   0x5 LB: > { %2450 = sst [smem:[#allocation6_spill]] %s1582_s29  ;;  %s1288_s9 = sadd.s32 4294967295, %s1590_s8   ;;  %s1590_s8 = sphi %s1649_s8, %s20_s8   ;;  %s1586_s30 = sphi %s1647_s30, %s2512_s30   ;;  %s1582_s29 = sphi %s1645_s29, %s2511_s29   ;;  %s1578_s28 = sphi %s1643_s28, %s2510_s28   ;;  %s1574_s27 = sphi %s1641_s27, %s2509_s27   ;;  %s1570_s26 = sphi %s1639_s26, %s2515_s26   ;;  %s1566_s25 = sphi %s1637_s25, %s2514_s25   ;;  %s1562_s24 = sphi %s1635_s24, %s2513_s24  }
   0x6   : > { %2451 = sst [smem:[#allocation7_spill]] %s1586_s30  ;;  %s1289_s10 = sadd.s32 4294967294, %s1590_s8  }
   0x7   : > { %s29_s11 = sadd.s32 1, %s1582_s29  ;;  %s32_s12 = sadd.s32 1, %s1586_s30 }
   0x8   : > { %p30_p0 = scmp.ge.s32.totalorder %s29_s11, 2  ;;  %p229_p1 = scmp.ne.s32.totalorder %s1570_s26, %s1566_s25 }
   0x9   : > { %p230_p2 = scmp.eq.s32.totalorder %s1288_s9, 3  ;;  %p235_p5 = scmp.ne.s32.totalorder %s1566_s25, %s1562_s24 }
   0xa   : > { %s2517_s11 = smov (%p30_p0, %s29_s11), 0  ;;  %s2519_s12 = smov (!%p30_p0, %s32_s12), %s1586_s30 }
   0xb   : > { %2452 = sst [smem:[#allocation8_spill]] %s2517_s11  ;;  %s215_s13 = ssub.s32 %s1582_s29, %s2517_s11 }
   0xc   : > { %p1686_p3 = por %p230_p2, %p229_p1  ;;  %p34_p4 = scmp.ge.s32.totalorder %s2519_s12, 2 }
   0xd   : > { %p236_p6 = scmp.eq.s32.totalorder %s1289_s10, 3  ;;  %p1296_p7 = scmp.ge.s32.totalorder %s1590_s8, 1 }
   0xe   : > { %s2521_s12 = smov (%p34_p4, %s2519_s12), 0  ;;  %p324_p9 = scmp.lt.s32.totalorder %s1590_s8, 5 }
   0xf   : > { %2454 = sst [smem:[#allocation9_spill]] %s2521_s12  ;;  %p1695_p8 = por %p236_p6, %p235_p5 }
  0x10   : > { %s214_s16 = ssub.s32 %s1586_s30, %s2521_s12  ;;  %s219_s17 = sadd.s32 1, %s1570_s26 }
  0x11   : > { %s216_s18 = sor.u32 %s215_s13, %s214_s16  ;;  %p325_p10 = pnand %p1296_p7, %p324_p9 }
  0x12   : > { %p217_p11 = scmp.eq.s32.totalorder %s216_s18, 0 }
  0x13   : > { %328 = sbr.rel (%p325_p10) target bundleno = 348 (0x15c), region = 48 }
  0x14   : > { %s1704_s19 = scalar_select %p217_p11, %s1570_s26, %s219_s17  }
  0x18   : > { %v1490_v0 = vld [vmem:[%s2419_s5 + $0x38] sm:$0xff]   ;;  %s1298_s22 = sshll.u32 %s1574_s27, 3  ;;  %v1491_v1 = vld [vmem:[%s2419_s5 + $0x30] sm:$0xff]   ;;  %p395_p12 = scmp.lt.s32.totalorder %s1578_s28, 1  ;;  %v1492_v2 = vld [vmem:[%s2419_s5 + $0x28] sm:$0xff]  }
  0x19   : > { %1365 = vmatprep.subr.bf16.mxu0 %v1490_v0  ;;  %1397 = vmatprep.subr.bf16.mxu1 %v1490_v0  ;;  %p397_p13 = scmp.lt.s32.totalorder %s1298_s22, 17  ;;  %s1720_s21 = sadd.s32 8, %s1298_s22  ;;  %v1493_v3 = vld [vmem:[%s2419_s5 + $0x20] sm:$0xff]   ;;  %v1735_v5 = vld [vmem:[%s2419_s5 + $0x18] sm:$0xff]   ;;  %v1750_v7 = vld [vmem:[%s2417_s3 + $0x8] ss:$0 sm:$0xff] }
  0x1a   : > { %1366 = vmatpush3.bf16.msra.mxu0 %v1490_v0  ;;  %1405 = vmatpush3.bf16.msra.mxu1 %v1490_v0  ;;  %s396_s10 = scalar_select %p395_p12, %s1578_s28, 1  ;;  %v1729_v4 = vld [vmem:[%s2417_s3] ss:$0 sm:$0xff]  ;;  %v1745_v6 = vld [vmem:[%s2417_s3 + $0x4] ss:$0 sm:$0xff]  ;;  %v1778_v23 = vld [vmem:[%s2419_s5 + $0x10] sm:$0xff]  }
  0x1b   : > { %1367 = vmatprep.subr.bf16.mxu0 %v1491_v1  ;;  %1398 = vmatprep.subr.bf16.mxu1 %v1491_v1  ;;  %s398_s17 = scalar_select %p397_p13, %s1298_s22, 17  ;;  %2456 = vst [vmem:[#allocation10_spill] sm:$0xff] %v1729_v4  ;;  %v1805_v32 = vld [vmem:[%s2417_s3 + $0x1] ss:$0 sm:$0xff]  ;;  %v1810_v33 = vld [vmem:[%s2417_s3 + $0x2] ss:$0 sm:$0xff] }
  0x1c   : > { %s1718_s18 = smul.u32 54, %s396_s10  ;;  %p414_p0 = scmp.lt.s32.totalorder %s1720_s21, 17  ;;  %2458 = vst [vmem:[#allocation11_spill] sm:$0xff] %v1805_v32  ;;  %2459 = vst [vmem:[#allocation12_spill] sm:$0xff] %v1810_v33  ;;  %v1826_v38 = vld [vmem:[%s2417_s3 + $0x5] ss:$0 sm:$0xff] }
  0x1d   : > { %s1413_s20 = smul.u32 3, %s398_s17  ;;  %v1858_v51 = vld [vmem:[%s2419_s5 + $0x8] sm:$0xff]   ;;  %s1348_s17 = sshll.u32 %s1574_s27, 4 }
  0x1e   : > { %1368 = vmatpush3.bf16.msra.mxu0 %v1491_v1  ;;  %1406 = vmatpush3.bf16.msra.mxu1 %v1491_v1  ;;  %s1756_s30 = scalar_select %p414_p0, %s1720_s21, 17 }
  0x1f   : > { %1369 = vmatprep.subr.bf16.mxu0 %v1492_v2  ;;  %1399 = vmatprep.subr.bf16.mxu1 %v1492_v2  ;;  %s401_s12 = sadd.s32 %s1718_s18, %s1413_s20  ;;  %s425_s20 = sadd.s32 1, %s1720_s21 }
  0x20   : > { %s1299_s13 = sshll.u32 %s401_s12, 3  ;;  %p1797_p1 = scmp.lt.s32.totalorder %s425_s20, 17 }
  0x21   : > { %s1740_s29 = scalar_lea.vmem %s2414_s0, %s1299_s13  ;;  %s1415_s13 = smul.u32 3, %s1756_s30 }
  0x22   : > { %1370 = vmatpush3.bf16.msra.mxu0 %v1492_v2  ;;  %1407 = vmatpush3.bf16.msra.mxu1 %v1492_v2  ;;  %v440_v8 = vld [vmem:[%s1740_s29] sm:$0xff]  ;;  %v441_v9 = vld [vmem:[%s1740_s29 + $0x8] sm:$0xff]  ;;  %v442_v10 = vld [vmem:[%s1740_s29 + $0x10] sm:$0x3]  ;;  %s2523_s20 = smov (!%p1797_p1, %s425_s20), 17  ;;  %s1332_s21 = sshll.u32 %s1578_s28, 5 }
  0x23   : > { %1371 = vmatprep.subr.bf16.mxu0 %v1493_v3  ;;  %1400 = vmatprep.subr.bf16.mxu1 %v1493_v3  ;;  %v443_v11 = vld [vmem:[%s1740_s29 + $0x18] sm:$0xff]  ;;  %v444_v12 = vld [vmem:[%s1740_s29 + $0x20] sm:$0xff]  ;;  %v445_v13 = vld [vmem:[%s1740_s29 + $0x28] sm:$0x3]  ;;  %464 = vst [vmem:[#allocation2] sm:$0xff] %v440_v8  ;;  %v527_v14 = vmul.f32 %v1729_v4, %v440_v8  ;;  %v528_v15 = vmul.f32 %v1729_v4, %v441_v9  ;;  %s1910_s22 = sadd.s32 %s1415_s13, %s1718_s18  ;;  %s1416_s23 = smul.u32 3, %s2523_s20 }
  0x24   : > { %465 = vst [vmem:[#allocation2 + $0x8] sm:$0xff] %v441_v9  ;;  %466 = vst [vmem:[#allocation2 + $0x10] sm:$0x3] %v442_v10  ;;  %v446_v16 = vld [vmem:[%s1740_s29 + $0x30] sm:$0xff]  ;;  %v447_v17 = vld [vmem:[%s1740_s29 + $0x38] sm:$0xff]  ;;  %v1768_v19 = vmul.f32 %v1729_v4, %v443_v11  ;;  %v1771_v20 = vmul.f32 %v1729_v4, %v444_v12  ;;  %v565_v21 = vmul.f32 %v1745_v6, %v443_v11  ;;  %s1158_s10 = sadd.s32 %s1348_s17, %s1332_s21  ;;  %s1592_s9 = smov [#allocation3]  }
  0x25   : > { %v448_v18 = vld [vmem:[%s1740_s29 + $0x40] sm:$0x3]  ;;  %467 = vst [vmem:[#allocation2 + $0x18] sm:$0xff] %v443_v11  ;;  %468 = vst [vmem:[#allocation2 + $0x20] sm:$0xff] %v444_v12  ;;  %v566_v22 = vmul.f32 %v1745_v6, %v444_v12  ;;  %v1781_v24 = vmul.f32 %v1729_v4, %v446_v16  ;;  %v1784_v25 = vmul.f32 %v1729_v4, %v447_v17  ;;  %v1813_v34 = vld [vmem:[%s1740_s29 + $0x68] sm:$0xff]  ;;  %s1928_s30 = sadd.s32 %s1416_s23, %s1718_s18  ;;  %s1301_s18 = sshll.u32 %s1910_s22, 3 }
  0x26   : > { %469 = vst [vmem:[#allocation2 + $0x28] sm:$0x3] %v445_v13  ;;  %470 = vst [vmem:[#allocation2 + $0x30] sm:$0xff] %v446_v16  ;;  %v1787_v26 = vmul.f32 %v1745_v6, %v446_v16  ;;  %v1790_v27 = vmul.f32 %v1745_v6, %v447_v17  ;;  %v1793_v28 = vld [vmem:[%s1740_s29 + $0x60] sm:$0xff]  ;;  %1372 = vmatpush3.bf16.msra.mxu0 %v1493_v3  ;;  %1408 = vmatpush3.bf16.msra.mxu1 %v1493_v3  ;;  %v454_v35 = vld [vmem:[%s1740_s29 + $0x70] sm:$0x3]  ;;  %s420_s22 = scalar_lea.vmem %s2415_s1, %s1301_s18 }
  0x27   : > { %471 = vst [vmem:[#allocation2 + $0x38] sm:$0xff] %v447_v17  ;;  %472 = vst [vmem:[#allocation2 + $0x40] sm:$0x3] %v448_v18  ;;  %v581_v29 = vadd.f32 %v565_v21, %v527_v14  ;;  %v582_v30 = vadd.f32 %v566_v22, %v528_v15  ;;  %v603_v31 = vmul.f32 %v1750_v7, %v446_v16  ;;  %v1817_v36 = vld [vmem:[%s1740_s29 + $0x78] sm:$0xff]  ;;  %1373 = vmatprep.subr.bf16.mxu0 %v1735_v5  ;;  %v1829_v39 = vld [vmem:[%s1740_s29 + $0x80] sm:$0xff]  ;;  %s1303_s13 = sshll.u32 %s1928_s30, 3 }
  0x28   : > { %2460 = vst [vmem:[#allocation13_spill] sm:$0xff] %v1817_v36  ;;  %476 = vst [vmem:[#allocation2 + $0x60] sm:$0xff] %v1793_v28  ;;  %1401 = vmatprep.subr.bf16.mxu1 %v1735_v5  ;;  %v604_v37 = vmul.f32 %v1750_v7, %v447_v17  ;;  %v457_v40 = vld [vmem:[%s1740_s29 + $0x88] sm:$0x3]  ;;  %v458_v41 = vld [vmem:[%s1740_s29 + $0x90] sm:$0xff]  ;;  %v535_v42 = vmul.f32 %v1729_v4, %v1793_v28  ;;  %v536_v43 = vmul.f32 %v1729_v4, %v1813_v34  ;;  %s434_s20 = scalar_lea.vmem %s2416_s2, %s1303_s13  ;;  %s386_s18 = sand.u32 1, %s1566_s25  }
  0x29   : > { %2461 = vst [vmem:[#allocation14_spill] sm:$0xff] %v1829_v39  ;;  %477 = vst [vmem:[#allocation2 + $0x68] sm:$0xff] %v1813_v34  ;;  %v619_v44 = vadd.f32 %v603_v31, %v581_v29  ;;  %v1841_v45 = vld [vmem:[%s1740_s29 + $0x98] sm:$0xff]  ;;  %v460_v46 = vld [vmem:[%s1740_s29 + $0xa0] sm:$0x3]  ;;  %v1846_v47 = vmul.f32 %v1729_v4, %v458_v41  ;;  %v573_v48 = vmul.f32 %v1745_v6, %v1817_v36  ;;  %s1297_s13 = sshll.u32 %s386_s18, 7 }
  0x2a   : > { %478 = vst [vmem:[#allocation2 + $0x70] sm:$0x3] %v454_v35  ;;  %479 = vst [vmem:[#allocation2 + $0x78] sm:$0xff] %v1817_v36  ;;  %v574_v49 = vmul.f32 %v1745_v6, %v1829_v39  ;;  %v1853_v50 = vld [vmem:[%s1740_s29 + $0x48] sm:$0xff]  ;;  %v620_v52 = vadd.f32 %v604_v37, %v582_v30  ;;  %v1863_v53 = vmul.f32 %v1729_v4, %v1841_v45  ;;  %v1873_v56 = vld [vmem:[%s1740_s29 + $0x50] sm:$0xff]  ;;  %1374 = vmatpush3.bf16.msra.mxu0 %v1735_v5  ;;  %s2319_s16 = scalar_lea.vmem [#allocation3], %s1297_s13 }
  0x2b   : > { %480 = vst [vmem:[#allocation2 + $0x80] sm:$0xff] %v1829_v39  ;;  %481 = vst [vmem:[#allocation2 + $0x88] sm:$0x3] %v457_v40  ;;  %v1866_v54 = vmul.f32 %v1745_v6, %v458_v41  ;;  %v1870_v55 = vmul.f32 %v1745_v6, %v1841_v45  ;;  %v451_v57 = vld [vmem:[%s1740_s29 + $0x58] sm:$0x3]  ;;  %v1878_v58 = vld [vmem:[%s1740_s29 + $0xa8] sm:$0xff]  ;;  %1409 = vmatpush3.bf16.msra.mxu1 %v1735_v5  ;;  %v1888_v62 = vadd.f32 %v573_v48, %v535_v42 }
  0x2c   : > { %482 = vst [vmem:[#allocation2 + $0x90] sm:$0xff] %v458_v41  ;;  %2462 = vst [vmem:[#allocation15_spill] sm:$0xff] %v1846_v47  ;;  %v635_v59 = vld [vmem:[#allocation2 + $0x1] sm:$0xff]  ;;  %v636_v60 = vld [vmem:[#allocation2 + $0x9] sm:$0xff]  ;;  %v1890_v63 = vadd.f32 %v574_v49, %v536_v43  ;;  %v1893_v0 = vmul.f32 %v1750_v7, %v458_v41  ;;  %1375 = vmatprep.subr.bf16.mxu0 %v1778_v23  ;;  %1402 = vmatprep.subr.bf16.mxu1 %v1778_v23  ;;  %s1333_s27 = sshll.u32 %s1158_s10, 7  ;;  %s1161_s28 = sshll.u32 %s2319_s16, 4  ;;  %s2357_s28 = int_to_ptr.vmem [resolvable:$true] %s1161_s28 }
  0x2d   : > { %483 = vst [vmem:[#allocation2 + $0x98] sm:$0xff] %v1841_v45  ;;  %484 = vst [vmem:[#allocation2 + $0xa0] sm:$0x3] %v460_v46  ;;  %v766_v61 = vld [vmem:[#allocation2 + $0x2] sm:$0xff]  ;;  %v637_v1 = vld [vmem:[#allocation2 + $0x19] sm:$0xff]  ;;  %v660_v3 = vmul.f32 %v1805_v32, %v635_v59  ;;  %v661_v5 = vmul.f32 %v1805_v32, %v636_v60  ;;  %s2355_s30 = scalar_lea.hbm %s2421_s7, %s1333_s27  ;;  %s1502_s11 = sshll.u32 %s1592_s9, 4  ;;  %s1503_s11 = int_to_ptr.vmem [resolvable:$false] %s1502_s11 }
  0x2e   : > { %2463 = vst [vmem:[#allocation16_spill] sm:$0xff] %v1863_v53  ;;  %473 = vst [vmem:[#allocation2 + $0x48] sm:$0xff] %v1853_v50  ;;  %v638_v2 = vld [vmem:[#allocation2 + $0x21] sm:$0xff]  ;;  %v1904_v8 = vld [vmem:[%s2417_s3 + $0x9] ss:$0 sm:$0xff]  ;;  %v791_v9 = vmul.f32 %v1810_v33, %v766_v61  ;;  %v1914_v12 = vmul.f32 %v1805_v32, %v637_v1  ;;  %v697_v14 = vmul.f32 %v1826_v38, %v637_v1  ;;  %1376 = vmatpush3.bf16.msra.mxu0 %v1778_v23  ;;  %s1504_s12 = scalar_lea.vmem %s1503_s11, 4096  ;;  %p1505_p6 = scmp.lt.s32.totalorder %s2357_s28, %s1503_s11 }
  0x2f   : > { %474 = vst [vmem:[#allocation2 + $0x50] sm:$0xff] %v1873_v56  ;;  %475 = vst [vmem:[#allocation2 + $0x58] sm:$0x3] %v451_v57  ;;  %v639_v10 = vld [vmem:[#allocation2 + $0x31] sm:$0xff]  ;;  %v640_v11 = vld [vmem:[#allocation2 + $0x39] sm:$0xff]  ;;  %v1917_v13 = vmul.f32 %v1805_v32, %v638_v2  ;;  %v698_v15 = vmul.f32 %v1826_v38, %v638_v2  ;;  %v676_v18 = vadd.f32 %v660_v3, %v619_v44  ;;  %1410 = vmatpush3.bf16.msra.mxu1 %v1778_v23 }
  0x30   : > { %485 = vst [vmem:[#allocation2 + $0xa8] sm:$0xff] %v1878_v58  ;;  %v1922_v16 = vmul.f32 %v1805_v32, %v639_v10  ;;  %v1925_v17 = vmul.f32 %v1805_v32, %v640_v11  ;;  %v677_v21 = vadd.f32 %v661_v5, %v620_v52  ;;  %v767_v22 = vld [vmem:[#allocation2 + $0xa] sm:$0xff]  ;;  %v768_v29 = vld [vmem:[#allocation2 + $0x1a] sm:$0xff]  ;;  %v769_v30 = vld [vmem:[#allocation2 + $0x22] sm:$0xff]  ;;  %v1933_v31 = vmul.f32 %v1826_v38, %v639_v10 }
  0x31   : > { %v1936_v35 = vmul.f32 %v1826_v38, %v640_v11  ;;  %v734_v37 = vmul.f32 %v1904_v8, %v639_v10  ;;  %v1942_v40 = vld [vmem:[%s2417_s3 + $0x6] ss:$0 sm:$0xff]  ;;  %1377 = vmatprep.subr.bf16.mxu0 %v1858_v51  ;;  %1403 = vmatprep.subr.bf16.mxu1 %v1858_v51  ;;  %v713_v41 = vadd.f32 %v697_v14, %v676_v18  ;;  %v770_v44 = vld [vmem:[#allocation2 + $0x32] sm:$0xff]  ;;  %v771_v46 = vld [vmem:[#allocation2 + $0x3a] sm:$0xff] }
  0x32   : > { %2464 = vst [vmem:[#allocation17_spill] sm:$0xff] %v1925_v17  ;;  %v1497_v23 = vld [vmem:[%s2419_s5] sm:$0xff]   ;;  %v714_v42 = vadd.f32 %v698_v15, %v677_v21  ;;  %v735_v43 = vmul.f32 %v1904_v8, %v640_v11  ;;  %v792_v48 = vmul.f32 %v1810_v33, %v767_v22  ;;  %v1954_v49 = vmul.f32 %v1810_v33, %v768_v29  ;;  %v1965_v59 = vld [vmem:[%s2417_s3 + $0xa] ss:$0 sm:$0xff] }
  0x33   : > { %v1957_v52 = vmul.f32 %v1810_v33, %v769_v30  ;;  %v1960_v57 = vmul.f32 %v1810_v33, %v770_v44  ;;  %v750_v60 = vadd.f32 %v734_v37, %v713_v41  ;;  %v1968_v1 = vmul.f32 %v1810_v33, %v771_v46  ;;  %v1971_v3 = vld [vmem:[#allocation2 + $0x61] sm:$0xff]  ;;  %1378 = vmatpush3.bf16.msra.mxu0 %v1858_v51  ;;  %v1985_v14 = vld [vmem:[#allocation2 + $0x69] sm:$0xff]  ;;  %v1987_v15 = vld [vmem:[#allocation2 + $0x79] sm:$0xff] }
  0x34   : > { %v751_v61 = vadd.f32 %v735_v43, %v714_v42  ;;  %v828_v2 = vmul.f32 %v1942_v40, %v768_v29  ;;  %1411 = vmatpush3.bf16.msra.mxu1 %v1858_v51  ;;  %v829_v5 = vmul.f32 %v1942_v40, %v769_v30  ;;  %v1980_v10 = vmul.f32 %v1942_v40, %v770_v44  ;;  %v1989_v18 = vld [vmem:[#allocation2 + $0x81] sm:$0xff]  ;;  %v647_v29 = vld [vmem:[#allocation2 + $0x91] sm:$0xff] }
  0x35   : > { %2465 = vst [vmem:[#allocation18_spill] sm:$0xff] %v1960_v57  ;;  %2466 = vst [vmem:[#allocation19_spill] sm:$0xff] %v1968_v1  ;;  %v1983_v11 = vmul.f32 %v1942_v40, %v771_v46  ;;  %1379 = vmatprep.subr.bf16.mxu0 %v1497_v23  ;;  %1404 = vmatprep.subr.bf16.mxu1 %v1497_v23  ;;  %v807_v51 = vadd.f32 %v791_v9, %v750_v60  ;;  %v1996_v30 = vld [vmem:[%s1740_s29 + $0xb0] sm:$0xff]  ;;  %v463_v37 = vld [vmem:[%s1740_s29 + $0xb8] sm:$0x3]  ;;  %s1498_s29 = scalar_lea.vmem %s2357_s28, 2048 }
  0x36   : > { %2467 = vst [vmem:[#allocation20_spill] sm:$0xff] %v1987_v15  ;;  %2468 = vst [vmem:[#allocation21_spill] sm:$0xff] %v1989_v18  ;;  %v808_v21 = vadd.f32 %v792_v48, %v751_v61  ;;  %v865_v22 = vmul.f32 %v1965_v59, %v770_v44  ;;  %v866_v41 = vmul.f32 %v1965_v59, %v771_v46  ;;  %v2007_v9 = vld [vmem:[%s420_s22] sm:$0xff]  ;;  %v2009_v44 = vld [vmem:[%s420_s22 + $0x8] sm:$0xff]  ;;  %p1499_p2 = scmp.ne.s32.totalorder %s2357_s28, %s1498_s29  ;;  %p1506_p7 = scmp.lt.s32.totalorder %s1504_s12, %s1498_s29 }
  0x37   : > { %v612_v42 = vmul.f32 %v1750_v7, %v1841_v45  ;;  %v627_v43 = vadd.f32 %v1893_v0, %v1888_v62  ;;  %v668_v53 = vmul.f32 %v1805_v32, %v1971_v3  ;;  %486 = vst [vmem:[#allocation2 + $0xb0] sm:$0xff] %v1996_v30  ;;  %487 = vst [vmem:[#allocation2 + $0xb8] sm:$0x3] %v463_v37  ;;  %v490_v48 = vld [vmem:[%s420_s22 + $0x10] sm:$0x3]  ;;  %v2019_v62 = vld [vmem:[%s434_s20] sm:$0xff]  ;;  %1380 = vmatpush3.bf16.msra.mxu0 %v1497_v23 }
  0x38   : > { %2469 = vst [vmem:[#allocation22_spill] sm:$0xff] %v2007_v9  ;;  %2470 = vst [vmem:[#allocation23_spill] sm:$0xff] %v2009_v44  ;;  %v844_v60 = vadd.f32 %v828_v2, %v807_v51  ;;  %v845_v61 = vadd.f32 %v829_v5, %v808_v21  ;;  %v669_v46 = vmul.f32 %v1805_v32, %v1985_v14  ;;  %v2021_v0 = vld [vmem:[%s434_s20 + $0x8] sm:$0xff]  ;;  %v497_v37 = vld [vmem:[%s434_s20 + $0x10] sm:$0x3]  ;;  %1412 = vmatpush3.bf16.msra.mxu1 %v1497_v23  ;;  %s2363_s20 = scalar_lea.sflag [#allocation4], %s386_s18  ;;  %p1500_p4 = pnand %p1499_p2, %p1686_p3 }
  0x39   : > { %v2015_v45 = vmul.f32 %v1805_v32, %v1987_v15  ;;  %492 = vst [vmem:[#allocation2 + $0xc0] sm:$0xff] %v2007_v9  ;;  %493 = vst [vmem:[#allocation2 + $0xc8] sm:$0xff] %v2009_v44  ;;  %v2026_v2 = vld [vmem:[%s2418_s4] ss:$0 sm:$0xff]  ;;  %v628_v5 = vadd.f32 %v612_v42, %v1890_v63  ;;  %v2031_v21 = vmul.f32 %v1805_v32, %v1989_v18  ;;  %v2041_v63 = vld [vmem:[#allocation2 + $0x62] sm:$0xff]  ;;  %p1507_p9 = por %p1506_p7, %p1505_p6 }
  0x3a   : > { %494 = vst [vmem:[#allocation2 + $0xd0] sm:$0x3] %v490_v48  ;;  %2471 = vst [vmem:[#allocation24_spill] sm:$0xff] %v2019_v62  ;;  %v648_v51 = vld [vmem:[#allocation2 + $0x99] sm:$0xff]  ;;  %v2034_v48 = vmul.f32 %v1805_v32, %v647_v29  ;;  %v881_v23 = vadd.f32 %v865_v22, %v844_v60  ;;  %v882_v44 = vadd.f32 %v866_v41, %v845_v61  ;;  %v2060_v61 = vld [vmem:[#allocation2 + $0x82] sm:$0xff]  ;;  %p1501_p5 = pneg %p1500_p4 }
  0x3b   : > { %2472 = vst [vmem:[#allocation25_spill] sm:$0xff] %v2021_v0  ;;  %499 = vst [vmem:[#allocation2 + $0xd8] sm:$0xff] %v2019_v62  ;;  %v2039_v47 = vmul.f32 %v1805_v32, %v648_v51  ;;  %v684_v1 = vadd.f32 %v668_v53, %v627_v43  ;;  %v685_v42 = vadd.f32 %v669_v46, %v628_v5  ;;  %v2052_v22 = vld [vmem:[#allocation2 + $0x7a] sm:$0xff] }
  0x3c   : > { %2473 = vst [vmem:[#allocation26_spill] sm:$0xff] %v2034_v48  ;;  %500 = vst [vmem:[#allocation2 + $0xe0] sm:$0xff] %v2021_v0  ;;  %v705_v9 = vmul.f32 %v1826_v38, %v1987_v15  ;;  %v706_v48 = vmul.f32 %v1826_v38, %v1989_v18  ;;  %v2048_v62 = vmul.f32 %v1826_v38, %v647_v29  ;;  %v2050_v0 = vld [vmem:[#allocation2 + $0x6a] sm:$0xff]  ;;  %p1508_p10 = pnand %p1507_p9, %p1501_p5 }
  0x3d   : > { %501 = vst [vmem:[#allocation2 + $0xe8] sm:$0x3] %v497_v37  ;;  %2474 = vst [vmem:[#allocation27_spill] sm:$0xff] %v2039_v47  ;;  %v904_v41 = vadd.f32 %v2026_v2, %v881_v23  ;;  %v905_v53 = vadd.f32 %v2026_v2, %v882_v44  ;;  %v2057_v43 = vmul.f32 %v1826_v38, %v648_v51  ;;  %v778_v47 = vld [vmem:[#allocation2 + $0x92] sm:$0xff]  ;;  %v779_v23 = vld [vmem:[#allocation2 + $0x9a] sm:$0xff] }
  0x3e   : > { %2475 = vst [vmem:[#allocation28_spill] sm:$0xff] %v2041_v63  ;;  %2476 = vst [vmem:[#allocation29_spill] sm:$0xff] %v2050_v0  ;;  %v742_v60 = vmul.f32 %v1904_v8, %v647_v29  ;;  %v721_v46 = vadd.f32 %v705_v9, %v684_v1  ;;  %v722_v37 = vadd.f32 %v706_v48, %v685_v42 }
  0x3f   : > { %2477 = vst [vmem:[#allocation30_spill] sm:$0xff] %v2052_v22  ;;  %2478 = vst [vmem:[#allocation31_spill] sm:$0xff] %v2060_v61  ;;  %v743_v5 = vmul.f32 %v1904_v8, %v648_v51  ;;  %v799_v18 = vmul.f32 %v1810_v33, %v2041_v63  ;;  %v920_v15 = vmax.f32 %v904_v41, 0.0  ;;  %v921_v32 = vmax.f32 %v905_v53, 0.0  ;;  %v2085_v53 = vld [vmem:[#allocation2 + $0x49] sm:$0xff] }
  0x40   : > { %v800_v44 = vmul.f32 %v1810_v33, %v2050_v0  ;;  %v2069_v57 = vmul.f32 %v1810_v33, %v2052_v22  ;;  %v758_v29 = vadd.f32 %v742_v60, %v721_v46  ;;  %v2073_v1 = vmul.f32 %v1810_v33, %v2060_v61 }
  0x41   : > { %v759_v17 = vadd.f32 %v743_v5, %v722_v37  ;;  %v2076_v9 = vmul.f32 %v1810_v33, %v778_v47  ;;  %v936_v51 = vpack.c.bf16 %v921_v32, %v920_v15  ;;  %v2079_v48 = vmul.f32 %v1810_v33, %v779_v23  ;;  %v2093_v32 = vld [vmem:[#allocation2 + $0x51] sm:$0xff] }
  0x42   : > { %v836_v42 = vmul.f32 %v1942_v40, %v2052_v22  ;;  %v837_v41 = vmul.f32 %v1942_v40, %v2060_v61  ;;  %v815_v60 = vadd.f32 %v799_v18, %v758_v29  ;;  %v2088_v37 = vmul.f32 %v1942_v40, %v778_v47  ;;  %v2095_v15 = vld [vmem:[#allocation2 + $0x4a] sm:$0xff]  ;;  %v2097_v33 = vld [vmem:[#allocation2 + $0x52] sm:$0xff] }
  0x43   : > { %2479 = vst [vmem:[#allocation32_spill] sm:$0xff] %v2076_v9  ;;  %2480 = vst [vmem:[#allocation33_spill] sm:$0xff] %v2079_v48  ;;  %v816_v46 = vadd.f32 %v800_v44, %v759_v17  ;;  %v2091_v5 = vmul.f32 %v1942_v40, %v779_v23  ;;  %1381 = vmatprep.mubr.bf16.mxu0 %v936_v51  ;;  %v873_v22 = vmul.f32 %v1965_v59, %v778_v47 }
  0x44   : > { %v874_v61 = vmul.f32 %v1965_v59, %v779_v23  ;;  %v583_v17 = vadd.f32 %v1787_v26, %v1768_v19  ;;  %v584_v18 = vadd.f32 %v1790_v27, %v1771_v20  ;;  %v852_v44 = vadd.f32 %v836_v42, %v815_v60  ;;  %v2119_v60 = vld [vmem:[#allocation2 + $0xb1] sm:$0xff] }
  0x45   : > { %2481 = vst [vmem:[#allocation34_spill] sm:$0xff] %v2091_v5  ;;  %v853_v29 = vadd.f32 %v837_v41, %v816_v46  ;;  %v605_v48 = vmul.f32 %v1750_v7, %v1853_v50  ;;  %v606_v9 = vmul.f32 %v1750_v7, %v1873_v56  ;;  %v736_v51 = vmul.f32 %v1904_v8, %v2085_v53  ;;  %v2117_v41 = vld [vmem:[#allocation2 + $0xa9] sm:$0xff] }
  0x46   : > { %v737_v47 = vmul.f32 %v1904_v8, %v2093_v32  ;;  %v867_v19 = vmul.f32 %v1965_v59, %v2095_v15  ;;  %v868_v20 = vmul.f32 %v1965_v59, %v2097_v33  ;;  %v889_v26 = vadd.f32 %v873_v22, %v852_v44  ;;  %2482 = vst [vmem:[#allocation35_spill] sm:$0xff] %v2119_v60 }
  0x47   : > { %v890_v27 = vadd.f32 %v874_v61, %v853_v29  ;;  %v621_v23 = vadd.f32 %v605_v48, %v583_v17  ;;  %v622_v42 = vadd.f32 %v606_v9, %v584_v18  ;;  %v537_v46 = vmul.f32 %v1729_v4, %v1817_v36  ;;  %v2133_v17 = vld [vmem:[#allocation2 + $0xaa] sm:$0xff]  ;;  %v2135_v18 = vld [vmem:[#allocation2 + $0xb2] sm:$0xff] }
  0x48   : > { %v538_v0 = vmul.f32 %v1729_v4, %v1829_v39  ;;  %v613_v63 = vmul.f32 %v1750_v7, %v1878_v58  ;;  %v614_v5 = vmul.f32 %v1750_v7, %v1996_v30  ;;  %v912_v22 = vadd.f32 %v2026_v2, %v889_v26 }
  0x49   : > { %v913_v61 = vadd.f32 %v2026_v2, %v890_v27  ;;  %v678_v9 = vadd.f32 %v1914_v12, %v621_v23  ;;  %v679_v48 = vadd.f32 %v1917_v13, %v622_v42  ;;  %v591_v44 = vadd.f32 %v1866_v54, %v537_v46 }
  0x4a   : > { %v592_v29 = vadd.f32 %v1870_v55, %v538_v0  ;;  %v744_v39 = vmul.f32 %v1904_v8, %v2117_v41  ;;  %v745_v26 = vmul.f32 %v1904_v8, %v2119_v60  ;;  %v928_v36 = vmax.f32 %v912_v22, 0.0 }
  0x4b   : > { %v929_v27 = vmax.f32 %v913_v61, 0.0  ;;  %v715_v12 = vadd.f32 %v1933_v31, %v678_v9  ;;  %v716_v13 = vadd.f32 %v1936_v35, %v679_v48  ;;  %v629_v23 = vadd.f32 %v613_v63, %v591_v44 }
  0x4c   : > { %v630_v42 = vadd.f32 %v614_v5, %v592_v29  ;;  %v875_v4 = vmul.f32 %v1965_v59, %v2133_v17  ;;  %v876_v54 = vmul.f32 %v1965_v59, %v2135_v18  ;;  %v569_v60 = vmul.f32 %v1745_v6, %v1853_v50 }
  0x4d   : > { %v940_v55 = vpack.c.bf16 %v929_v27, %v928_v36  ;;  %v752_v0 = vadd.f32 %v736_v51, %v715_v12  ;;  %v753_v46 = vadd.f32 %v737_v47, %v716_v13  ;;  %v686_v22 = vadd.f32 %v2015_v45, %v629_v23  ;;  %v2483_v13 = vld [vmem:[#allocation17_spill] sm:$0xff] }
  0x4e   : > { %v687_v31 = vadd.f32 %v2031_v21, %v630_v42  ;;  %v570_v35 = vmul.f32 %v1745_v6, %v1873_v56  ;;  %v607_v63 = vmul.f32 %v1750_v7, %v1793_v28  ;;  %v585_v51 = vadd.f32 %v569_v60, %v1781_v24 }
  0x4f   : > { %1389 = vmatprep.mubr.bf16.mxu1 %v940_v55  ;;  %v809_v5 = vadd.f32 %v1954_v49, %v752_v0  ;;  %v810_v36 = vadd.f32 %v1957_v52, %v753_v46  ;;  %v608_v47 = vmul.f32 %v1750_v7, %v1813_v34  ;;  %v723_v45 = vadd.f32 %v2048_v62, %v686_v22  ;;  %v2484_v55 = vld [vmem:[#allocation34_spill] sm:$0xff]  ;;  %v2485_v46 = vld [vmem:[#allocation28_spill] sm:$0xff] }
  0x50   : > { %v724_v21 = vadd.f32 %v2057_v43, %v687_v31  ;;  %v586_v61 = vadd.f32 %v570_v35, %v1784_v25  ;;  %v701_v9 = vmul.f32 %v1826_v38, %v2085_v53  ;;  %v623_v44 = vadd.f32 %v607_v63, %v585_v51  ;;  %v2486_v63 = vld [vmem:[#allocation29_spill] sm:$0xff] }
  0x51   : > { %v846_v48 = vadd.f32 %v1980_v10, %v809_v5  ;;  %v847_v49 = vadd.f32 %v1983_v11, %v810_v36  ;;  %v702_v24 = vmul.f32 %v1826_v38, %v2093_v32  ;;  %v760_v52 = vadd.f32 %v744_v39, %v723_v45 }
  0x52   : > { %v761_v60 = vadd.f32 %v745_v26, %v724_v21  ;;  %v624_v29 = vadd.f32 %v608_v47, %v586_v61  ;;  %v738_v62 = vmul.f32 %v1904_v8, %v1971_v3  ;;  %v680_v25 = vadd.f32 %v1922_v16, %v623_v44 }
  0x53   : > { %v883_v43 = vadd.f32 %v867_v19, %v846_v48  ;;  %v884_v27 = vadd.f32 %v868_v20, %v847_v49  ;;  %v739_v12 = vmul.f32 %v1904_v8, %v1985_v14  ;;  %v817_v10 = vadd.f32 %v2069_v57, %v760_v52  ;;  %v2488_v48 = vld [vmem:[#allocation22_spill] sm:$0xff]  ;;  %v2489_v52 = vld [vmem:[#allocation19_spill] sm:$0xff] }
  0x54   : > { %v818_v11 = vadd.f32 %v2073_v1, %v761_v60  ;;  %v681_v23 = vadd.f32 %v2483_v13, %v624_v29  ;;  %v832_v39 = vmul.f32 %v1942_v40, %v2095_v15  ;;  %v717_v19 = vadd.f32 %v701_v9, %v680_v25  ;;  %v2202_v29 = vld [vmem:[#allocation2 + $0xc1] sm:$0xff]  ;;  %v2492_v25 = vld [vmem:[#allocation23_spill] sm:$0xff] }
  0x55   : > { %v906_v26 = vadd.f32 %v2026_v2, %v883_v43  ;;  %v907_v42 = vadd.f32 %v2026_v2, %v884_v27  ;;  %v833_v16 = vmul.f32 %v1942_v40, %v2097_v33  ;;  %v854_v20 = vadd.f32 %v2088_v37, %v817_v10  ;;  %v2487_v37 = vld [vmem:[#allocation18_spill] sm:$0xff]  ;;  %v2491_v43 = vld [vmem:[#allocation16_spill] sm:$0xff] }
  0x56   : > { %v855_v0 = vadd.f32 %v2484_v55, %v818_v11  ;;  %v718_v57 = vadd.f32 %v702_v24, %v681_v23  ;;  %v869_v1 = vmul.f32 %v1965_v59, %v2485_v46  ;;  %v754_v35 = vadd.f32 %v738_v62, %v717_v19  ;;  %v2207_v10 = vld [vmem:[#allocation2 + $0xc9] sm:$0xff]  ;;  %v2493_v55 = vld [vmem:[#allocation35_spill] sm:$0xff] }
  0x57   : > { %v922_v22 = vmax.f32 %v906_v26, 0.0  ;;  %v923_v31 = vmax.f32 %v907_v42, 0.0  ;;  %v870_v5 = vmul.f32 %v1965_v59, %v2486_v63  ;;  %v891_v36 = vadd.f32 %v875_v4, %v854_v20 }
  0x58   : > { %v892_v51 = vadd.f32 %v876_v54, %v855_v0  ;;  %v755_v47 = vadd.f32 %v739_v12, %v718_v57  ;;  %v577_v45 = vmul.f32 %v1745_v6, %v1878_v58  ;;  %v811_v61 = vadd.f32 %v2487_v37, %v754_v35  ;;  %v2490_v54 = vld [vmem:[#allocation15_spill] sm:$0xff]  ;;  %v2215_v57 = vld [vmem:[#allocation2 + $0xc2] sm:$0xff] }
  0x59   : > { %v937_v21 = vpack.c.bf16 %v923_v31, %v922_v22  ;;  %v578_v9 = vmul.f32 %v1745_v6, %v1996_v30  ;;  %v615_v49 = vmul.f32 %v1750_v7, %v2488_v48  ;;  %v914_v44 = vadd.f32 %v2026_v2, %v891_v36  ;;  %v2217_v22 = vld [vmem:[#allocation2 + $0xca] sm:$0xff] }
  0x5a   : > { %v915_v24 = vadd.f32 %v2026_v2, %v892_v51  ;;  %v812_v4 = vadd.f32 %v2489_v52, %v755_v47  ;;  %v593_v60 = vadd.f32 %v577_v45, %v2490_v54  ;;  %v848_v62 = vadd.f32 %v832_v39, %v811_v61  ;;  %v2494_v36 = vld [vmem:[#allocation26_spill] sm:$0xff]  ;;  %v2495_v47 = vld [vmem:[#allocation27_spill] sm:$0xff] }
  0x5b   : > { %1382 = vmatmul.mubr.bf16.vlgmr.msra.gmra.mxu0 %v937_v21  ;;  %v594_v27 = vadd.f32 %v578_v9, %v2491_v43  ;;  %v616_v12 = vmul.f32 %v1750_v7, %v2492_v25  ;;  %v709_v11 = vmul.f32 %v1826_v38, %v2117_v41  ;;  %v930_v13 = vmax.f32 %v914_v44, 0.0  ;;  %v2496_v52 = vld [vmem:[#allocation10_spill] sm:$0xff] }
  0x5c   : > { %v931_v23 = vmax.f32 %v915_v24, 0.0  ;;  %v849_v26 = vadd.f32 %v833_v16, %v812_v4  ;;  %v631_v42 = vadd.f32 %v615_v49, %v593_v60  ;;  %v885_v19 = vadd.f32 %v869_v1, %v848_v62 }
  0x5d   : > { %v632_v20 = vadd.f32 %v616_v12, %v594_v27  ;;  %v710_v0 = vmul.f32 %v1826_v38, %v2493_v55  ;;  %v746_v39 = vmul.f32 %v1904_v8, %v2202_v29  ;;  %v747_v16 = vmul.f32 %v1904_v8, %v2207_v10 }
  0x5e   : > { %v941_v31 = vpack.c.bf16 %v931_v23, %v930_v13  ;;  %v886_v35 = vadd.f32 %v870_v5, %v849_v26  ;;  %v688_v51 = vadd.f32 %v2494_v36, %v631_v42  ;;  %v908_v1 = vadd.f32 %v2026_v2, %v885_v19  ;;  %v2498_v23 = vld [vmem:[#allocation14_spill] sm:$0xff] }
  0x5f   : > { %v689_v45 = vadd.f32 %v2495_v47, %v632_v20  ;;  %v840_v21 = vmul.f32 %v1942_v40, %v2133_v17  ;;  %v841_v37 = vmul.f32 %v1942_v40, %v2135_v18  ;;  %v877_v5 = vmul.f32 %v1965_v59, %v2215_v57 }
  0x60   : > { %1390 = vmatmul.mubr.bf16.vlgmr.msra.gmra.mxu1 %v941_v31  ;;  %v909_v61 = vadd.f32 %v2026_v2, %v886_v35  ;;  %v725_v9 = vadd.f32 %v709_v11, %v688_v51  ;;  %v878_v49 = vmul.f32 %v1965_v59, %v2217_v22  ;;  %v924_v44 = vmax.f32 %v908_v1, 0.0  ;;  %v2497_v11 = vld [vmem:[#allocation13_spill] sm:$0xff]  ;;  %v2502_v1 = vld [vmem:[#allocation20_spill] sm:$0xff] }
  0x61   : > { %v726_v24 = vadd.f32 %v710_v0, %v689_v45  ;;  %v533_v4 = vmul.f32 %v2496_v52, %v1853_v50  ;;  %v534_v54 = vmul.f32 %v2496_v52, %v1873_v56  ;;  %v571_v43 = vmul.f32 %v1745_v6, %v1793_v28  ;;  %v2499_v50 = vld [vmem:[#allocation11_spill] sm:$0xff]  ;;  %v2500_v56 = vld [vmem:[#allocation32_spill] sm:$0xff]  ;;  %v2501_v31 = vld [vmem:[#allocation33_spill] sm:$0xff] }
  0x62   : > { %v925_v60 = vmax.f32 %v909_v61, 0.0  ;;  %v762_v62 = vadd.f32 %v746_v39, %v725_v9  ;;  %v572_v27 = vmul.f32 %v1745_v6, %v1813_v34  ;;  %v609_v13 = vmul.f32 %v1750_v7, %v2497_v11  ;;  %v2503_v61 = vld [vmem:[#allocation21_spill] sm:$0xff] }
  0x63   : > { %v763_v12 = vadd.f32 %v747_v16, %v726_v24  ;;  %v610_v26 = vmul.f32 %v1750_v7, %v2498_v23  ;;  %v666_v42 = vmul.f32 %v2499_v50, %v2085_v53  ;;  %v587_v0 = vadd.f32 %v571_v43, %v533_v4  ;;  %v2506_v43 = vld [vmem:[#allocation31_spill] sm:$0xff] }
  0x64   : > { %v938_v19 = vpack.c.bf16 %v925_v60, %v924_v44  ;;  %v819_v20 = vadd.f32 %v2500_v56, %v762_v62  ;;  %v588_v39 = vadd.f32 %v572_v27, %v534_v54  ;;  %v667_v34 = vmul.f32 %v2499_v50, %v2093_v32  ;;  %v2504_v44 = vld [vmem:[#allocation12_spill] sm:$0xff] }
  0x65   : > { %v820_v28 = vadd.f32 %v2501_v31, %v763_v12  ;;  %v703_v35 = vmul.f32 %v1826_v38, %v1971_v3  ;;  %v704_v36 = vmul.f32 %v1826_v38, %v1985_v14  ;;  %v625_v16 = vadd.f32 %v609_v13, %v587_v0  ;;  %v2508_v0 = vld [vmem:[#allocation25_spill] sm:$0xff] }
  0x66   : > { %1385 = vmatprep.mubr.bf16.mxu0 %v938_v19  ;;  %v856_v51 = vadd.f32 %v840_v21, %v819_v20  ;;  %v626_v53 = vadd.f32 %v610_v26, %v588_v39  ;;  %v740_v47 = vmul.f32 %v1904_v8, %v2502_v1  ;;  %v741_v9 = vmul.f32 %v1904_v8, %v2503_v61 }
  0x67   : > { %v857_v45 = vadd.f32 %v841_v37, %v820_v28  ;;  %v797_v32 = vmul.f32 %v2504_v44, %v2095_v15  ;;  %v798_v3 = vmul.f32 %v2504_v44, %v2097_v33  ;;  %v682_v4 = vadd.f32 %v666_v42, %v625_v16  ;;  %v2505_v37 = vld [vmem:[#allocation30_spill] sm:$0xff]  ;;  %v2507_v42 = vld [vmem:[#allocation24_spill] sm:$0xff] }
  0x68   : > { %v893_v24 = vadd.f32 %v877_v5, %v856_v51  ;;  %v683_v14 = vadd.f32 %v667_v34, %v626_v53  ;;  %v834_v21 = vmul.f32 %v1942_v40, %v2485_v46  ;;  %v835_v60 = vmul.f32 %v1942_v40, %v2486_v63  ;;  %v654_v28 = vld [vmem:[#allocation2 + $0xe1] sm:$0xff] }
  0x69   : > { %v894_v54 = vadd.f32 %v878_v49, %v857_v45  ;;  %v871_v62 = vmul.f32 %v1965_v59, %v2505_v37  ;;  %v872_v27 = vmul.f32 %v1965_v59, %v2506_v43  ;;  %v719_v12 = vadd.f32 %v703_v35, %v682_v4 }
  0x6a   : > { %v916_v15 = vadd.f32 %v2026_v2, %v893_v24  ;;  %v720_v33 = vadd.f32 %v704_v36, %v683_v14  ;;  %v541_v5 = vmul.f32 %v2496_v52, %v1878_v58  ;;  %v542_v46 = vmul.f32 %v2496_v52, %v1996_v30  ;;  %v653_v52 = vld [vmem:[#allocation2 + $0xd9] sm:$0xff] }
  0x6b   : > { %v917_v11 = vadd.f32 %v2026_v2, %v894_v54  ;;  %v579_v63 = vmul.f32 %v1745_v6, %v2488_v48  ;;  %v580_v49 = vmul.f32 %v1745_v6, %v2492_v25  ;;  %v756_v23 = vadd.f32 %v740_v47, %v719_v12 }
  0x6c   : > { %v932_v13 = vmax.f32 %v916_v15, 0.0  ;;  %v757_v26 = vadd.f32 %v741_v9, %v720_v33  ;;  %v617_v19 = vmul.f32 %v1750_v7, %v2507_v42  ;;  %v618_v39 = vmul.f32 %v1750_v7, %v2508_v0 }
  0x6d   : > { %v933_v56 = vmax.f32 %v917_v11, 0.0  ;;  %v595_v20 = vadd.f32 %v579_v63, %v541_v5  ;;  %v596_v58 = vadd.f32 %v580_v49, %v542_v46  ;;  %v813_v31 = vadd.f32 %v797_v32, %v756_v23  ;;  %v2313_v5 = vld [vmem:[%s2420_s6] ss:$0 sm:$0xff] }
  0x6e   : > { %v814_v30 = vadd.f32 %v798_v3, %v757_v26  ;;  %v674_v48 = vmul.f32 %v2499_v50, %v2117_v41  ;;  %v675_v6 = vmul.f32 %v2499_v50, %v2493_v55  ;;  %v711_v36 = vmul.f32 %v1826_v38, %v2202_v29  ;;  %v785_v3 = vld [vmem:[#allocation2 + $0xe2] sm:$0xff] }
  0x6f   : > { %v942_v25 = vpack.c.bf16 %v933_v56, %v932_v13  ;;  %v633_v34 = vadd.f32 %v617_v19, %v595_v20  ;;  %v634_v35 = vadd.f32 %v618_v39, %v596_v58  ;;  %v850_v51 = vadd.f32 %v834_v21, %v813_v31 }
  0x70   : > { %v851_v16 = vadd.f32 %v835_v60, %v814_v30  ;;  %v712_v7 = vmul.f32 %v1826_v38, %v2207_v10  ;;  %v748_v47 = vmul.f32 %v1904_v8, %v653_v52  ;;  %v749_v41 = vmul.f32 %v1904_v8, %v654_v28  ;;  %v784_v10 = vld [vmem:[#allocation2 + $0xda] sm:$0xff] }
  0x71   : > { %1393 = vmatprep.mubr.bf16.mxu1 %v942_v25  ;;  %v690_v53 = vadd.f32 %v674_v48, %v633_v34  ;;  %v691_v1 = vadd.f32 %v675_v6, %v634_v35  ;;  %v887_v45 = vadd.f32 %v871_v62, %v850_v51  ;;  %v805_v9 = vmul.f32 %v2504_v44, %v2133_v17 }
  0x72   : > { %v888_v55 = vadd.f32 %v872_v27, %v851_v16  ;;  %v806_v29 = vmul.f32 %v2504_v44, %v2135_v18  ;;  %v842_v8 = vmul.f32 %v1942_v40, %v2215_v57  ;;  %v843_v14 = vmul.f32 %v1942_v40, %v2217_v22 }
  0x73   : > { %v727_v50 = vadd.f32 %v711_v36, %v690_v53  ;;  %v728_v61 = vadd.f32 %v712_v7, %v691_v1  ;;  %v910_v32 = vadd.f32 %v2026_v2, %v887_v45  ;;  %v879_v18 = vmul.f32 %v1965_v59, %v784_v10 }
  0x74   : > { %v911_v38 = vadd.f32 %v2026_v2, %v888_v55  ;;  %v880_v44 = vmul.f32 %v1965_v59, %v785_v3 }
  0x75   : > { %v764_v24 = vadd.f32 %v748_v47, %v727_v50  ;;  %v765_v4 = vadd.f32 %v749_v41, %v728_v61  ;;  %v926_v21 = vmax.f32 %v910_v32, 0.0 }
  0x76   : > { %v927_v54 = vmax.f32 %v911_v38, 0.0 }
  0x77   : > { %v821_v17 = vadd.f32 %v805_v9, %v764_v24  ;;  %v822_v60 = vadd.f32 %v806_v29, %v765_v4 }
  0x78   : > { %v939_v37 = vpack.c.bf16 %v927_v54, %v926_v21 }
  0x79   : > { %v858_v62 = vadd.f32 %v842_v8, %v821_v17  ;;  %v859_v43 = vadd.f32 %v843_v14, %v822_v60 }
  0x7a   : > { %1386 = vmatmul.mubr.bf16.gmra.mxu0 %v939_v37 }
  0x7b   : > { %v895_v27 = vadd.f32 %v879_v18, %v858_v62  ;;  %v896_v15 = vadd.f32 %v880_v44, %v859_v43 }
  0x7d   : > { %v918_v57 = vadd.f32 %v2026_v2, %v895_v27  ;;  %v919_v40 = vadd.f32 %v2026_v2, %v896_v15 }
  0x7f   : > { %v934_v22 = vmax.f32 %v918_v57, 0.0  ;;  %v935_v12 = vmax.f32 %v919_v40, 0.0 }
  0x81   : > { %v943_v33 = vpack.c.bf16 %v935_v12, %v934_v22 }
  0x83   : > { %1394 = vmatmul.mubr.bf16.gmra.mxu1 %v943_v33 }
 0x11b   : > { %v1383_v59 = vpop.f32.mrf.mxu0 }
 0x11c   : > { %v1058_v11 = vadd.f32 %v1383_v59, %v2313_v5 }
 0x11d   : > { %v1049_v46 = vpop.f32.mrf.mxu0 }
 0x11e   : > { %v1114_v63 = vmax.f32 %v1058_v11, 0.0  ;;  %v1050_v49 = vadd.f32 %v2313_v5, %v1049_v46 }
 0x11f   : > { %v1384_v2 = vpop.f32.mrf.mxu0 }
 0x120   : > { %1130 = vst [vmem:[%s2319_s16 + $0x10] sm:$0xff] %v1114_v63  ;;  %v1391_v13 = vpop.f32.mrf.mxu1  ;;  %v1112_v23 = vmax.f32 %v1050_v49, 0.0  ;;  %v1061_v26 = vadd.f32 %v1384_v2, %v2313_v5 }
 0x121   : > { %v1090_v42 = vadd.f32 %v1391_v13, %v2313_v5  ;;  %v1052_v19 = vpop.f32.mrf.mxu0 }
 0x122   : > { %1128 = vst [vmem:[%s2319_s16] sm:$0xff] %v1112_v23  ;;  %v1081_v56 = vpop.f32.mrf.mxu1  ;;  %v1115_v20 = vmax.f32 %v1061_v26, 0.0  ;;  %v1053_v58 = vadd.f32 %v2313_v5, %v1052_v19 }
 0x123   : > { %v1122_v0 = vmax.f32 %v1090_v42, 0.0  ;;  %v1082_v39 = vadd.f32 %v2313_v5, %v1081_v56 }
 0x124   : > { %1131 = vst [vmem:[%s2319_s16 + $0x18] sm:$0xff] %v1115_v20  ;;  %v1392_v31 = vpop.f32.mrf.mxu1  ;;  %v1113_v30 = vmax.f32 %v1053_v58, 0.0 }
 0x125   : > { %1138 = vst [vmem:[%s2319_s16 + $0x50] sm:$0xff] %v1122_v0  ;;  %v1120_v52 = vmax.f32 %v1082_v39, 0.0  ;;  %v1093_v28 = vadd.f32 %v1392_v31, %v2313_v5 }
 0x126   : > { %1129 = vst [vmem:[%s2319_s16 + $0x8] sm:$0xff] %v1113_v30  ;;  %v1084_v48 = vpop.f32.mrf.mxu1 }
 0x127   : > { %1136 = vst [vmem:[%s2319_s16 + $0x40] sm:$0xff] %v1120_v52  ;;  %v1123_v6 = vmax.f32 %v1093_v28, 0.0  ;;  %v1085_v25 = vadd.f32 %v2313_v5, %v1084_v48 }
 0x129   : > { %1139 = vst [vmem:[%s2319_s16 + $0x58] sm:$0xff] %v1123_v6  ;;  %v1121_v34 = vmax.f32 %v1085_v25, 0.0 }
 0x12b   : > { %1137 = vst [vmem:[%s2319_s16 + $0x48] sm:$0xff] %v1121_v34 }
 0x13a   : > { %v1387_v35 = vpop.f32.mrf.mxu0 }
 0x13b   : > { %v1074_v36 = vadd.f32 %v1387_v35, %v2313_v5 }
 0x13c   : > { %v1065_v51 = vpop.f32.mrf.mxu0 }
 0x13d   : > { %v1118_v16 = vmax.f32 %v1074_v36, 0.0  ;;  %v1066_v7 = vadd.f32 %v2313_v5, %v1065_v51 }
 0x13e   : > { %v1388_v53 = vpop.f32.mrf.mxu0 }
 0x13f   : > { %1134 = vst [vmem:[%s2319_s16 + $0x30] sm:$0xff] %v1118_v16  ;;  %v1116_v1 = vmax.f32 %v1066_v7, 0.0  ;;  %v1077_v47 = vadd.f32 %v1388_v53, %v2313_v5 }
 0x140   : > { %v1068_v41 = vpop.f32.mrf.mxu0 }
 0x141   : > { %1132 = vst [vmem:[%s2319_s16 + $0x20] sm:$0xff] %v1116_v1  ;;  %v1119_v45 = vmax.f32 %v1077_v47, 0.0  ;;  %v1069_v55 = vadd.f32 %v2313_v5, %v1068_v41 }
 0x143   : > { %v1395_v50 = vpop.f32.mrf.mxu1  ;;  %1135 = vst [vmem:[%s2319_s16 + $0x38] sm:$0xff] %v1119_v45  ;;  %v1117_v61 = vmax.f32 %v1069_v55, 0.0 }
 0x144   : > { %v1106_v9 = vadd.f32 %v1395_v50, %v2313_v5 }
 0x145   : > { %v1097_v29 = vpop.f32.mrf.mxu1  ;;  %1133 = vst [vmem:[%s2319_s16 + $0x28] sm:$0xff] %v1117_v61 }
 0x146   : > { %v1126_v32 = vmax.f32 %v1106_v9, 0.0  ;;  %v1098_v38 = vadd.f32 %v2313_v5, %v1097_v29 }
 0x147   : > { %v1396_v10 = vpop.f32.mrf.mxu1 }
 0x148   : > { %1142 = vst [vmem:[%s2319_s16 + $0x70] sm:$0xff] %v1126_v32  ;;  %v1124_v3 = vmax.f32 %v1098_v38, 0.0  ;;  %v1109_v24 = vadd.f32 %v1396_v10, %v2313_v5 }
 0x149   : > { %v1100_v4 = vpop.f32.mrf.mxu1 }
 0x14a   : > { %1140 = vst [vmem:[%s2319_s16 + $0x60] sm:$0xff] %v1124_v3  ;;  %v1127_v8 = vmax.f32 %v1109_v24, 0.0  ;;  %v1101_v14 = vadd.f32 %v2313_v5, %v1100_v4 }
 0x14c   : > { %1143 = vst [vmem:[%s2319_s16 + $0x78] sm:$0xff] %v1127_v8  ;;  %v1125_v21 = vmax.f32 %v1101_v14, 0.0 }
 0x14e   : > { %1141 = vst [vmem:[%s2319_s16 + $0x68] sm:$0xff] %v1125_v21 }
 0x14f   : > { %1511 = shalt.err (!%p1508_p10)
}
 0x150   : > { %s1512_s18 = scalar_lea.hbm %s2355_s30, 2048  ;;  %s1516_s17 = scalar_lea.hbm %s2421_s7, 8192 }
 0x151   : > { %p1513_p11 = scmp.ne.s32.totalorder %s2355_s30, %s1512_s18  ;;  %p1517_p0 = scmp.lt.s32.totalorder %s2355_s30, %s2421_s7 }
 0x152   : > { %p1518_p1 = scmp.lt.s32.totalorder %s1516_s17, %s1512_s18 }
 0x153   : > { %p1514_p12 = pnand %p1513_p11, %p1686_p3 }
 0x154   : > { %p1519_p2 = por %p1518_p1, %p1517_p0 }
 0x155   : > { %p1515_p13 = pneg %p1514_p12 }
 0x157   : > { %p1520_p4 = pnand %p1519_p2, %p1515_p13 }
 0x159   : > { %1523 = shalt.err (!%p1520_p4)
}
 0x15a   : > { %s1593_s27 = smov 128   ;;  %s1594_s22 = smov 8  }
 0x15b   : > { %1417 = dma.vmem_to_hbm [thread:$0]  (%p1686_p3), %s2357_s28, 2048, %s2355_s30, %s2363_s20, %s1593_s27, %s1593_s27, %s1594_s22  }
 0x15c PF: > { %p1423_p5 = scmp.ge.s32.totalorder %s1590_s8, 2  ;;  %s1176_s23 = sand.u32 1, %s1562_s24  }
 0x15d   : > { %s1177_s29 = scalar_lea.sflag [#allocation4], %s1176_s23 }
 0x15e   : > { %p1420_p6 = pnand %p1423_p5, %p1695_p8 }
 0x160   : > { %p1421_p7 = pneg %p1420_p6 }
 0x162   : > { %1557 = dma.done.wait (%p1421_p7), %s1177_s29, 2048  }
 0x163   : > { %1559 = vsyncadd (%p1421_p7), %s1177_s29, 4294965248  ;;  %s20_s8 = sadd.s32 1, %s1590_s8   ;;  %s2509_s27 = sld [smem:[#allocation6_spill]] }
 0x164   : > { %p17_p9 = scmp.ge.s32.totalorder %s20_s8, 6   ;;  %s2510_s28 = sld [smem:[#allocation7_spill]] }
 0x165   : > { %s2511_s29 = sld [smem:[#allocation8_spill]]  ;;  %s2513_s24 = smov %s1566_s25 }
 0x166   : > { %s2512_s30 = sld [smem:[#allocation9_spill]]  ;;  %s2514_s25 = smov %s1570_s26 }
 0x167   : > { %s2515_s26 = smov %s1704_s19  ;;  %19 = sbr.rel (!%p17_p9) target bundleno = 5 (0x5), region = 93 }
 0x16c   :  { %1182 = vsyncpa [#allocation4], 1 }
 0x16d   :  { %1184 = vsyncpa [#allocation4 + $0x1], 1 }

</bundles_post_ra>
